<compile_context>
chip_gen: v7x
topology: tpu7x:2x2x1
jax: 0.10.0
libtpu: 0.0.40
codegen_flags: <defaults>
</compile_context>

<pallas_src>
import jax
import jax.numpy as jnp
from jax.experimental import pallas as pl
from jax.experimental.pallas import tpu as pltpu

BN_EPS = 1e-5


def _round_up(a: int, b: int) -> int:
    return ((a + b - 1) // b) * b


def encoder_kernel(x2_ref, a_ref, b_ref, w2l_ref, w2r_ref, b2d_ref, o_ref):
    """One row tile.

    x2_ref          : (TM2, 2)   column 0 = even rows of x, column 1 = odd rows of x
    a_ref, b_ref    : (1, 16)    folded Linear1+BatchNorm scale / shift
    w2l_ref, w2r_ref: (16, 128)  w2 placed in lanes [0:64] / [64:128] (zeros elsewhere)
    b2d_ref         : (1, 128)   [b2 | b2]
    o_ref           : (TM2, 128) packed output: row r = [out_{2r} | out_{2r+1}]
    """
    x2 = x2_ref[...]                                 # (TM2, 2)
    a = a_ref[...]                                   # (1, 16)
    b = b_ref[...]                                   # (1, 16)
    # Folded Linear(1->16) + BatchNorm + ReLU: pure VPU broadcast math (no K=1 matmul).
    he = jnp.maximum(x2[:, 0:1] * a + b, 0.0)        # (TM2, 16) even rows
    ho = jnp.maximum(x2[:, 1:2] * a + b, 0.0)        # (TM2, 16) odd rows
    # Linear(16->64) for both row streams, written lane-dense into a 128-wide block.
    o_ref[...] = (
        jnp.dot(he, w2l_ref[...], preferred_element_type=jnp.float32)
        + jnp.dot(ho, w2r_ref[...], preferred_element_type=jnp.float32)
        + b2d_ref[...]
    )


def encoder_forward(x, params, *, tm: int = 8192):
    """x: (N, 1) float32.  Returns (N, 64) float32 (training-mode BatchNorm forward)."""
    w1, b1 = params["w1"], params["b1"]            # (1,16), (1,16)
    gamma, beta = params["gamma"], params["beta"]  # (1,16), (1,16)
    w2, b2 = params["w2"], params["b2"]            # (16,64), (1,64)

    N = x.shape[0]
    xf = x.reshape(N).astype(jnp.float32)

    # ---- Fold Linear(1->16) + BatchNorm1d (training-mode batch statistics) ----
    # h = x*w1 + b1  =>  mean_h = mean_x*w1 + b1,  var_h = var_x*w1^2  (b1 cancels).
    mean_x = jnp.mean(xf)
    var_x = jnp.mean(jnp.square(xf - mean_x))                 # biased variance (PyTorch BN)
    inv_std = jax.lax.rsqrt(var_x * jnp.square(w1) + BN_EPS)  # (1,16)
    A = w1 * gamma * inv_std                                  # (1,16)
    B = beta - mean_x * A                                     # (1,16)
    # TODO(synk): running_mean / running_var buffer updates (BN momentum) are not emitted;
    # only the forward output is produced.

    # ---- Pad w2/b2 to a lane-dense 128-wide packed layout ----
    zeros64 = jnp.zeros((16, 64), jnp.float32)
    w2l = jnp.concatenate([w2, zeros64], axis=1)              # (16,128): even rows -> lanes 0:64
    w2r = jnp.concatenate([zeros64, w2], axis=1)              # (16,128): odd rows  -> lanes 64:128
    b2d = jnp.concatenate([b2, b2], axis=1)                   # (1,128)

    # ---- Row tiling: balanced tiles of <= tm rows (each a multiple of 16) ----
    n16 = _round_up(max(N, 1), 16)
    tm_cap = max(16, _round_up(tm, 16))
    num_tiles = -(-n16 // tm_cap)                             # cdiv
    tm_eff = _round_up(-(-n16 // num_tiles), 16)              # balanced tile, <= tm_cap
    n_pad = tm_eff * num_tiles
    tm2 = tm_eff // 2
    n2 = n_pad // 2

    # Pad once, then a FREE metadata reshape to (n2, 2): col 0 = even rows, col 1 = odd rows.
    x2 = jnp.pad(xf, (0, n_pad - N)).reshape(n2, 2)

    param_spec_16 = pl.BlockSpec((1, 16), lambda i: (0, 0))
    out_packed = pl.pallas_call(
        encoder_kernel,
        out_shape=jax.ShapeDtypeStruct((n2, 128), jnp.float32),
        grid_spec=pltpu.PrefetchScalarGridSpec(
            num_scalar_prefetch=0,
            grid=(num_tiles,),
            in_specs=[
                pl.BlockSpec((tm2, 2), lambda i: (i, 0)),      # packed even/odd x
                param_spec_16,                                 # A
                param_spec_16,                                 # B
                pl.BlockSpec((16, 128), lambda i: (0, 0)),     # w2l
                pl.BlockSpec((16, 128), lambda i: (0, 0)),     # w2r
                pl.BlockSpec((1, 128), lambda i: (0, 0)),      # b2d
            ],
            out_specs=pl.BlockSpec((tm2, 128), lambda i: (i, 0)),
        ),
        compiler_params=pltpu.CompilerParams(
            dimension_semantics=("parallel",),
            vmem_limit_bytes=32 * 1024 * 1024,
        ),
    )(x2, A, B, w2l, w2r, b2d)

    # Free, metadata-only reshape: (n2, 128) row-major == (n_pad, 64) row-major.
    return out_packed.reshape(n_pad, 64)[:N]


def init_params(key):
    """Deterministic parameter init mirroring nn.Linear / nn.BatchNorm1d shapes.

    Linear weights use PyTorch-style uniform(-1/sqrt(fan_in), 1/sqrt(fan_in)),
    stored transposed as (in_features, out_features).  BatchNorm: gamma=1, beta=0.
    """
    k1, k2, k3, k4 = jax.random.split(key, 4)
    bound1 = 1.0 / jnp.sqrt(1.0)   # fan_in = 1
    bound2 = 1.0 / jnp.sqrt(16.0)  # fan_in = 16
    return {
        "w1": jax.random.uniform(k1, (1, 16), jnp.float32, -bound1, bound1),
        "b1": jax.random.uniform(k2, (1, 16), jnp.float32, -bound1, bound1),
        "gamma": jnp.ones((1, 16), jnp.float32),
        "beta": jnp.zeros((1, 16), jnp.float32),
        "w2": jax.random.uniform(k3, (16, 64), jnp.float32, -bound2, bound2),
        "b2": jax.random.uniform(k4, (1, 64), jnp.float32, -bound2, bound2),
    }


def encoder_reference(x, params):
    """Pure-JAX reference (explicit Linear -> training-mode BN -> ReLU -> Linear)."""
    h = x @ params["w1"] + params["b1"]
    mean = jnp.mean(h, axis=0, keepdims=True)
    var = jnp.mean((h - mean) ** 2, axis=0, keepdims=True)
    h = (h - mean) / jnp.sqrt(var + BN_EPS)
    h = h * params["gamma"] + params["beta"]
    h = jnp.maximum(h, 0.0)
    return h @ params["w2"] + params["b2"]


if __name__ == "__main__":
    key = jax.random.PRNGKey(0)
    pkey, xkey1, xkey2 = jax.random.split(key, 3)
    params = init_params(pkey)

    fwd = jax.jit(encoder_forward)

    # Small shape consistent with the module (batch=8, in_features=1).
    x_small = jax.random.normal(xkey1, (8, 1), jnp.float32)
    out_small = jax.block_until_ready(fwd(x_small, params))
    ref_small = encoder_reference(x_small, params)
    assert out_small.shape == (8, 64), out_small.shape
    assert jnp.allclose(out_small, ref_small, atol=1e-3, rtol=1e-3), "small-batch mismatch"

    # Multi-tile path: exercises the parallel grid + batch padding (N not a tile multiple).
    x_big = jax.random.normal(xkey2, (4100, 1), jnp.float32)
    out_big = jax.block_until_ready(fwd(x_big, params))
    ref_big = encoder_reference(x_big, params)
    assert out_big.shape == (4100, 64), out_big.shape
    assert jnp.allclose(out_big, ref_big, atol=1e-3, rtol=1e-3), "tiled-batch mismatch"

    print("KERNEL_OK")
</pallas_src>

<mosaic_0001>
module attributes {stable_mosaic.version = 11 : i64} {
  func.func @encoder_kernel(%arg0: i32, %arg1: memref<8x2xf32, #tpu.memory_space<vmem>>, %arg2: memref<1x16xf32, #tpu.memory_space<vmem>>, %arg3: memref<1x16xf32, #tpu.memory_space<vmem>>, %arg4: memref<16x128xf32, #tpu.memory_space<vmem>>, %arg5: memref<16x128xf32, #tpu.memory_space<vmem>>, %arg6: memref<1x128xf32, #tpu.memory_space<vmem>>, %arg7: memref<8x128xf32, #tpu.memory_space<vmem>>) attributes {dimension_semantics = [#tpu.dimension_semantics<parallel>], iteration_bounds = array<i64: 1>, scalar_prefetch = 0 : i64, scratch_operands = 0 : i64, tpu.core_type = #tpu.core_type<tc>, window_params = [{transform_indices = @transform_0, window_bounds = array<i64: 8, 2>}, {pipeline_mode = #tpu.pipeline_mode<synchronous>, transform_indices = @transform_1, window_bounds = array<i64: 1, 16>}, {pipeline_mode = #tpu.pipeline_mode<synchronous>, transform_indices = @transform_2, window_bounds = array<i64: 1, 16>}, {pipeline_mode = #tpu.pipeline_mode<synchronous>, transform_indices = @transform_3, window_bounds = array<i64: 16, 128>}, {pipeline_mode = #tpu.pipeline_mode<synchronous>, transform_indices = @transform_4, window_bounds = array<i64: 16, 128>}, {pipeline_mode = #tpu.pipeline_mode<synchronous>, transform_indices = @transform_5, window_bounds = array<i64: 1, 128>}, {transform_indices = @transform_6, window_bounds = array<i64: 8, 128>}]} {
    %c0 = arith.constant 0 : index
    %c0_0 = arith.constant 0 : index
    %0 = vector.load %arg1[%c0, %c0_0] : memref<8x2xf32, #tpu.memory_space<vmem>>, vector<8x2xf32>
    %c0_1 = arith.constant 0 : index
    %c0_2 = arith.constant 0 : index
    %1 = vector.load %arg2[%c0_1, %c0_2] : memref<1x16xf32, #tpu.memory_space<vmem>>, vector<1x16xf32>
    %c0_3 = arith.constant 0 : index
    %c0_4 = arith.constant 0 : index
    %2 = vector.load %arg3[%c0_3, %c0_4] : memref<1x16xf32, #tpu.memory_space<vmem>>, vector<1x16xf32>
    %3 = vector.extract_strided_slice %0 {offsets = [0, 0], sizes = [8, 1], strides = [1, 1]} : vector<8x2xf32> to vector<8x1xf32>
    %4 = vector.broadcast %3 : vector<8x1xf32> to vector<8x16xf32>
    %5 = vector.broadcast %1 : vector<1x16xf32> to vector<8x16xf32>
    %6 = arith.mulf %4, %5 : vector<8x16xf32>
    %7 = vector.broadcast %2 : vector<1x16xf32> to vector<8x16xf32>
    %8 = arith.addf %6, %7 : vector<8x16xf32>
    %cst = arith.constant 0.000000e+00 : f32
    %9 = vector.broadcast %cst : f32 to vector<8x16xf32>
    %10 = arith.maximumf %8, %9 : vector<8x16xf32>
    %11 = vector.extract_strided_slice %0 {offsets = [0, 1], sizes = [8, 1], strides = [1, 1]} : vector<8x2xf32> to vector<8x1xf32>
    %12 = vector.broadcast %11 : vector<8x1xf32> to vector<8x16xf32>
    %13 = vector.broadcast %1 : vector<1x16xf32> to vector<8x16xf32>
    %14 = arith.mulf %12, %13 : vector<8x16xf32>
    %15 = vector.broadcast %2 : vector<1x16xf32> to vector<8x16xf32>
    %16 = arith.addf %14, %15 : vector<8x16xf32>
    %cst_5 = arith.constant 0.000000e+00 : f32
    %17 = vector.broadcast %cst_5 : f32 to vector<8x16xf32>
    %18 = arith.maximumf %16, %17 : vector<8x16xf32>
    %c0_6 = arith.constant 0 : index
    %c0_7 = arith.constant 0 : index
    %19 = vector.load %arg4[%c0_6, %c0_7] : memref<16x128xf32, #tpu.memory_space<vmem>>, vector<16x128xf32>
    %cst_8 = arith.constant dense<0.000000e+00> : vector<8x128xf32>
    %20 = tpu.matmul %10, %19, %cst_8 {dimension_numbers = #tpu.dot_dimension_numbers<[1], [0], [0], [1], [0, 0, 1, 1], [], []>} : vector<8x16xf32>, vector<16x128xf32>, vector<8x128xf32> -> vector<8x128xf32>
    %c0_9 = arith.constant 0 : index
    %c0_10 = arith.constant 0 : index
    %21 = vector.load %arg5[%c0_9, %c0_10] : memref<16x128xf32, #tpu.memory_space<vmem>>, vector<16x128xf32>
    %cst_11 = arith.constant dense<0.000000e+00> : vector<8x128xf32>
    %22 = tpu.matmul %18, %21, %cst_11 {dimension_numbers = #tpu.dot_dimension_numbers<[1], [0], [0], [1], [0, 0, 1, 1], [], []>} : vector<8x16xf32>, vector<16x128xf32>, vector<8x128xf32> -> vector<8x128xf32>
    %23 = arith.addf %20, %22 : vector<8x128xf32>
    %c0_12 = arith.constant 0 : index
    %c0_13 = arith.constant 0 : index
    %24 = vector.load %arg6[%c0_12, %c0_13] : memref<1x128xf32, #tpu.memory_space<vmem>>, vector<1x128xf32>
    %25 = vector.broadcast %24 : vector<1x128xf32> to vector<8x128xf32>
    %26 = arith.addf %23, %25 : vector<8x128xf32>
    %c0_14 = arith.constant 0 : index
    %c0_15 = arith.constant 0 : index
    %27 = vector.load %arg7[%c0_14, %c0_15] : memref<8x128xf32, #tpu.memory_space<vmem>>, vector<8x128xf32>
    tpu.vector_store %arg7[%c0_14, %c0_15], %26 {strides = array<i32>} : memref<8x128xf32, #tpu.memory_space<vmem>>, vector<8x128xf32>,
    return
  }
  func.func @transform_0(%arg0: i32) -> (i32, i32) {
    %c0_i32 = arith.constant 0 : i32
    %c0_i32_0 = arith.constant 0 : i32
    return %arg0, %c0_i32 : i32, i32
  }
  func.func @transform_1(%arg0: i32) -> (i32, i32) {
    %c0_i32 = arith.constant 0 : i32
    %c0_i32_0 = arith.constant 0 : i32
    %c0_i32_1 = arith.constant 0 : i32
    return %c0_i32, %c0_i32_0 : i32, i32
  }
  func.func @transform_2(%arg0: i32) -> (i32, i32) {
    %c0_i32 = arith.constant 0 : i32
    %c0_i32_0 = arith.constant 0 : i32
    %c0_i32_1 = arith.constant 0 : i32
    return %c0_i32, %c0_i32_0 : i32, i32
  }
  func.func @transform_3(%arg0: i32) -> (i32, i32) {
    %c0_i32 = arith.constant 0 : i32
    %c0_i32_0 = arith.constant 0 : i32
    %c0_i32_1 = arith.constant 0 : i32
    return %c0_i32, %c0_i32_0 : i32, i32
  }
  func.func @transform_4(%arg0: i32) -> (i32, i32) {
    %c0_i32 = arith.constant 0 : i32
    %c0_i32_0 = arith.constant 0 : i32
    %c0_i32_1 = arith.constant 0 : i32
    return %c0_i32, %c0_i32_0 : i32, i32
  }
  func.func @transform_5(%arg0: i32) -> (i32, i32) {
    %c0_i32 = arith.constant 0 : i32
    %c0_i32_0 = arith.constant 0 : i32
    %c0_i32_1 = arith.constant 0 : i32
    return %c0_i32, %c0_i32_0 : i32, i32
  }
  func.func @transform_6(%arg0: i32) -> (i32, i32) {
    %c0_i32 = arith.constant 0 : i32
    %c0_i32_0 = arith.constant 0 : i32
    return %arg0, %c0_i32 : i32, i32
  }
}

</mosaic_0001>

<bundles_post_ra>
// kernel: encoder_forward.1
= control target key start
LH: loop header
LB: loop body
LE: loop exit
PB: predicated region body
PF: predicated region fallthrough
CT: control target
= control target key end

     0   :  { %v255_v0 = vmov 0   ;;  %v256_v5 = vmov 0.0|0.0   ;;  %v257_v6 = vmov 1   ;;  %vm258_vm0 = vmmov 0   ;;  %s322_s0 = inlined_call_operand.vmem [shape: f32[8,2], index: 0, kind: input, shape index: {}]   ;;  %s323_s3 = inlined_call_operand.vmem [shape: f32[16,128], index: 3, kind: input, shape index: {}]   ;;  %s324_s4 = inlined_call_operand.vmem [shape: f32[16,128], index: 4, kind: input, shape index: {}]   ;;  %s325_s1 = inlined_call_operand.vmem [shape: f32[1,16], index: 1, kind: input, shape index: {}]   ;;  %s326_s2 = inlined_call_operand.vmem [shape: f32[1,16], index: 2, kind: input, shape index: {}]   ;;  %s327_s5 = inlined_call_operand.vmem [shape: f32[1,128], index: 5, kind: input, shape index: {}]   ;;  %s328_s6 = inlined_call_operand.vmem [shape: f32[8,128], index: 6, kind: output, shape index: {}]  }
   0x1   :  { %253 = vset.pattern.permute.xlu0 %v255_v0  ;;  %v23_v1 = vld [vmem:[%s322_s0] sm:$0xff]  ;;  %v54_v3 = vld [vmem:[%s323_s3 + $0x8] sm:$0xff]  ;;  %245 = vmatprep.subr.bf16.mxu1 %v256_v5  ;;  %v259_v7 = vmov 0.0   ;;  %vm57_vm1 = vcmask 130048  }
   0x2   :  { %28 = vperm.xlu0 %253, %v23_v1   ;;  %v53_v2 = vld [vmem:[%s323_s3] sm:$0xff]  ;;  %242 = vmatprep.subr.bf16.mxu0 %v256_v5  ;;  %v56_v9 = vld [vmem:[%s324_s4 + $0x8] sm:$0xff] }
   0x3   :  { %v246_v4 = vpack.c.bf16 %v54_v3, %v53_v2  ;;  %239 = vmatprep.mubr.msk.f32.mxu1 %vm258_vm0, %v259_v7  ;;  %v55_v8 = vld [vmem:[%s324_s4] sm:$0xff]  ;;  %232 = vmatprep.mubr.msk.f32.mxu0 %vm258_vm0, %v259_v7 }
   0x4   :  { %v243_v10 = vpack.c.bf16 %v56_v9, %v55_v8  ;;  %v217_v11 = vld [vmem:[%s325_s1] ss:$0 sm:$0xff] }
   0x5   :  { %247 = vmatpush3.bf16.msra.mxu1 %v246_v4  ;;  %v218_v12 = vld [vmem:[%s326_s2] ss:$0 sm:$0xff] }
   0x6   :  { %254 = vset.pattern.permute.xlu0 %v257_v6  ;;  %244 = vmatpush3.bf16.msra.mxu0 %v243_v10  ;;  %v221_v24 = vld [vmem:[%s327_s5] ss:$0 sm:$0xff] }
   0x7   :  { %47 = vperm.xlu0 %254, %v23_v1  }
  0x81   :  { %v29_v13 = vpop.permute.xlu0 %28 }
  0x82   :  { %v37_v14 = vmul.f32 %v217_v11, %v29_v13 }
  0x84   :  { %v44_v15 = vadd.f32 %v218_v12, %v37_v14 }
  0x86   :  { %v45_v16 = vmax.f32 %v44_v15, 0.0  ;;  %v48_v17 = vpop.permute.xlu0 %47 }
  0x87   :  { %v50_v18 = vmul.f32 %v217_v11, %v48_v17 }
  0x88   :  { %240 = vmatmul.mubr.msk.f32.vlgmr.msra.gmra.mrb[0].mxu1 %vm57_vm1, %v45_v16 }
  0x89   :  { %v51_v19 = vadd.f32 %v218_v12, %v50_v18 }
  0x8b   :  { %v52_v20 = vmax.f32 %v51_v19, 0.0 }
  0x8d   :  { %233 = vmatmul.mubr.msk.f32.vlgmr.msra.gmra.mrb[0].mxu0 %vm57_vm1, %v52_v20 }
 0x15b   :  { %v200_v21 = vpop.f32.mrb[0].mxu1 }
 0x15c   :  { %v241_v22 = vpop.f32.mrb[1].mxu1 }
 0x160   :  { %v127_v23 = vpop.f32.mrb[0].mxu0 }
 0x161   :  { %v201_v25 = vadd.f32 %v200_v21, %v127_v23  ;;  %v234_v26 = vpop.f32.mrb[1].mxu0 }
 0x163   :  { %v211_v27 = vadd.f32 %v221_v24, %v201_v25 }
 0x165   :  { %212 = vst [vmem:[%s328_s6] sm:$0xff] %v211_v27 }

</bundles_post_ra>
